<compile_context>
chip_gen: v6e
topology: v6e:2x2x1
jax: 0.10.0
libtpu: 0.0.40
codegen_flags: <defaults>
</compile_context>

<pallas_src>
from functools import partial

import jax
import jax.numpy as jnp
from jax.experimental import pallas as pl
from jax.experimental.pallas import tpu as pltpu

SEQ = 30       # BERT max_length=30 tokens
HIDDEN = 768   # bert-base-uncased hidden size
OUT = 128      # nn.Linear(768, 128) output dim


def _softmax_rows(logits):
    """Numerically stable softmax with an exact divide (rows sum to 1)."""
    m = jnp.max(logits, axis=-1, keepdims=True)
    e = jnp.exp(logits - m)
    return e / jnp.sum(e, axis=-1, keepdims=True)


def preference_pair_kernel(ctx_ref, rsp_ref, w_ref, b_ref, out_ref):
    # ctx_ref/rsp_ref: [SEQ, HIDDEN] f32; w_ref: [HIDDEN, OUT] bf16;
    # b_ref: [1, OUT] f32; out_ref: [2, OUT] f32.
    inv_seq = jnp.float32(1.0 / SEQ)
    ctx_emb = jnp.sum(ctx_ref[...], axis=0, keepdims=True) * inv_seq   # [1, 768]
    rsp_emb = jnp.sum(rsp_ref[...], axis=0, keepdims=True) * inv_seq   # [1, 768]
    fused = jnp.concatenate([ctx_emb, rsp_emb], axis=0)                # [2, 768]
    w = w_ref[...].astype(jnp.float32)                                 # bf16 -> f32 (free vs DMA)
    logits = jnp.dot(fused, w, preferred_element_type=jnp.float32) + b_ref[...]
    out_ref[...] = _softmax_rows(logits)


def preference_batched_kernel(ctx_ref, rsp_ref, w_ref, b_ref, out_ref):
    # ctx_ref/rsp_ref: [batch_tile, SEQ, HIDDEN] f32
    # out_ref:         [batch_tile, 2*OUT] f32  (lanes [0,128)=context, [128,256)=response)
    inv_seq = jnp.float32(1.0 / SEQ)
    w = w_ref[...].astype(jnp.float32)
    b = b_ref[...]
    ctx_emb = jnp.sum(ctx_ref[...], axis=1) * inv_seq                  # [bt, 768]
    rsp_emb = jnp.sum(rsp_ref[...], axis=1) * inv_seq                  # [bt, 768]
    ctx_probs = _softmax_rows(
        jnp.dot(ctx_emb, w, preferred_element_type=jnp.float32) + b)
    rsp_probs = _softmax_rows(
        jnp.dot(rsp_emb, w, preferred_element_type=jnp.float32) + b)
    # Lane-dense, 128-aligned concat -> unmasked full-width stores.
    out_ref[...] = jnp.concatenate([ctx_probs, rsp_probs], axis=1)


def _cost(rows):
    flops = rows * (SEQ * HIDDEN + 2 * HIDDEN * OUT)          # pool + matmul
    transcendentals = rows * OUT                              # exp
    bytes_accessed = (rows * SEQ * HIDDEN * 4                 # activations (f32)
                      + HIDDEN * OUT * 2                      # weight (bf16)
                      + OUT * 4                               # bias
                      + rows * OUT * 4)                       # output
    return pl.CostEstimate(flops=flops, transcendentals=transcendentals,
                           bytes_accessed=bytes_accessed)


def prepare_linear_params(w, b):
    """One-time parameter prep, hoisted out of the per-call path.

    w: [HIDDEN, OUT] (note: PyTorch nn.Linear stores [OUT, HIDDEN]; transpose
       once before calling).  Returns (w_bf16 [HIDDEN,OUT], b [1,OUT] f32).
    """
    assert w.shape == (HIDDEN, OUT), "w must be [in, out] (transpose PyTorch weight)"
    return jnp.asarray(w, jnp.bfloat16), jnp.asarray(b, jnp.float32).reshape(1, OUT)


@jax.jit
def preference_forward(context_encoding, response_encoding, w_bf16, b2):
    """Single pair, mirroring PreferenceModule.forward.

    context_encoding / response_encoding: [1, SEQ, HIDDEN] (BERT last_hidden_state).
    w_bf16 / b2: output of prepare_linear_params.  Returns [2, OUT] softmax rows.
    """
    ctx = context_encoding.reshape(SEQ, HIDDEN).astype(jnp.float32)   # free squeeze
    rsp = response_encoding.reshape(SEQ, HIDDEN).astype(jnp.float32)
    # Single invocation: no grid, whole (tiny) arrays resident in VMEM.
    return pl.pallas_call(
        preference_pair_kernel,
        out_shape=jax.ShapeDtypeStruct((2, OUT), jnp.float32),
        in_specs=[pl.BlockSpec(memory_space=pltpu.MemorySpace.VMEM)] * 4,
        out_specs=pl.BlockSpec(memory_space=pltpu.MemorySpace.VMEM),
        cost_estimate=_cost(2),
    )(ctx, rsp, w_bf16, b2)


@partial(jax.jit, static_argnames=("batch_tile",))
def preference_forward_batched(ctx_batch, rsp_batch, w_bf16, b2, *, batch_tile=16):
    """Throughput path: B (context, response) pairs per call.

    ctx_batch / rsp_batch: [B, SEQ, HIDDEN].  No wrapper-side interleave: the
    two encodings are separate inputs, each tiled along the batch.  Weight and
    bias stay VMEM-resident across the 'parallel' batch grid (sharded across
    TensorCores on v7x).  Returns [B, 2, OUT] ([:,0]=context, [:,1]=response).
    """
    B = ctx_batch.shape[0]
    assert B % batch_tile == 0, "B must be divisible by batch_tile"
    assert batch_tile % 4 == 0, "batch_tile must be a multiple of 4"
    ctx_batch = ctx_batch.astype(jnp.float32)
    rsp_batch = rsp_batch.astype(jnp.float32)

    # Explicit VMEM limit: 2 inputs x double-buffer x block, plus headroom.
    # (Needed on v5e, whose default scoped limit is 16 MiB, when batch_tile is large.)
    in_block_bytes = batch_tile * SEQ * HIDDEN * 4
    vmem_limit = int(max(32 << 20, 4 * in_block_bytes + (8 << 20)))

    out = pl.pallas_call(
        preference_batched_kernel,
        out_shape=jax.ShapeDtypeStruct((B, 2 * OUT), jnp.float32),
        grid=(B // batch_tile,),
        in_specs=[
            pl.BlockSpec((batch_tile, SEQ, HIDDEN), lambda i: (i, 0, 0)),
            pl.BlockSpec((batch_tile, SEQ, HIDDEN), lambda i: (i, 0, 0)),
            pl.BlockSpec((HIDDEN, OUT), lambda i: (0, 0)),   # weight resident
            pl.BlockSpec((1, OUT), lambda i: (0, 0)),        # bias resident
        ],
        out_specs=pl.BlockSpec((batch_tile, 2 * OUT), lambda i: (i, 0)),
        compiler_params=pltpu.CompilerParams(
            dimension_semantics=("parallel",),
            vmem_limit_bytes=vmem_limit),
        cost_estimate=_cost(2 * B),
    )(ctx_batch, rsp_batch, w_bf16, b2)
    # Free row-major reshape: [:, :128] = context probs, [:, 128:] = response probs.
    return out.reshape(B, 2, OUT)


def reference_forward(ctx, rsp, w, b):
    """Pure-JAX f32 reference. ctx/rsp: [B, SEQ, HIDDEN] -> [2B, OUT]."""
    ctx_emb = jnp.mean(ctx, axis=1)                       # [B, 768]
    rsp_emb = jnp.mean(rsp, axis=1)                       # [B, 768]
    fused = jnp.stack([ctx_emb, rsp_emb], axis=1).reshape(-1, HIDDEN)
    logits = fused @ w + b
    return jax.nn.softmax(logits, axis=1)


if __name__ == "__main__":
    key = jax.random.PRNGKey(0)
    k_ctx, k_rsp, k_w, k_b, kb_ctx, kb_rsp = jax.random.split(key, 6)

    # Synthetic "encode_text" outputs (BERT last_hidden_state, batch 1).
    context_encoding = jax.random.normal(k_ctx, (1, SEQ, HIDDEN), jnp.float32)
    response_encoding = jax.random.normal(k_rsp, (1, SEQ, HIDDEN), jnp.float32)

    # Deterministic Linear(768, 128) parameters, stored as [in, out].
    bound = 1.0 / jnp.sqrt(jnp.float32(HIDDEN))
    w = jax.random.uniform(k_w, (HIDDEN, OUT), jnp.float32, -bound, bound)
    b = jax.random.uniform(k_b, (OUT,), jnp.float32, -bound, bound)

    # One-time parameter prep (hoisted out of the jitted call path).
    w_bf16, b2 = prepare_linear_params(w, b)

    # --- single pair (module's forward) -------------------------------------
    out = jax.block_until_ready(
        preference_forward(context_encoding, response_encoding, w_bf16, b2))
    ref = reference_forward(context_encoding, response_encoding, w, b)
    assert out.shape == (2, OUT)
    # bf16 weight -> relaxed tolerance vs the f32 reference.
    assert jnp.allclose(out, ref, atol=1e-3, rtol=1e-2), "single-pair mismatch"
    # Exact softmax divide -> rows sum to 1 to f32 rounding.
    assert jnp.allclose(jnp.sum(out, axis=1), 1.0, atol=1e-4), "rows must sum to 1"

    # --- batched throughput path --------------------------------------------
    B = 32
    ctx_b = jax.random.normal(kb_ctx, (B, SEQ, HIDDEN), jnp.float32)
    rsp_b = jax.random.normal(kb_rsp, (B, SEQ, HIDDEN), jnp.float32)
    # grid = (4,): even and >= 2 steps per TensorCore on v7x.
    out_b = jax.block_until_ready(
        preference_forward_batched(ctx_b, rsp_b, w_bf16, b2, batch_tile=8))
    ref_b = reference_forward(ctx_b, rsp_b, w, b).reshape(B, 2, OUT)
    assert out_b.shape == (B, 2, OUT)
    assert jnp.allclose(out_b, ref_b, atol=1e-3, rtol=1e-2), "batched mismatch"
    assert jnp.allclose(jnp.sum(out_b, axis=-1), 1.0, atol=1e-4)

    print("KERNEL_OK")
</pallas_src>

<mosaic_0001>
module attributes {stable_mosaic.version = 11 : i64} {
  func.func @preference_pair_kernel(%arg0: memref<30x768xf32, #tpu.memory_space<vmem>>, %arg1: memref<30x768xf32, #tpu.memory_space<vmem>>, %arg2: memref<768x128xbf16, #tpu.memory_space<vmem>>, %arg3: memref<1x128xf32, #tpu.memory_space<vmem>>, %arg4: memref<2x128xf32, #tpu.memory_space<vmem>>) attributes {dimension_semantics = [], scalar_prefetch = 0 : i64, scratch_operands = 0 : i64, tpu.core_type = #tpu.core_type<tc>} {
    %c0 = arith.constant 0 : index
    %c0_0 = arith.constant 0 : index
    %0 = vector.load %arg0[%c0, %c0_0] : memref<30x768xf32, #tpu.memory_space<vmem>>, vector<30x768xf32>
    %cst = arith.constant dense<0.000000e+00> : vector<768xf32>
    %1 = vector.multi_reduction <add>, %0, %cst [0] : vector<30x768xf32> to vector<768xf32>
    %2 = vector.shape_cast %1 : vector<768xf32> to vector<1x768xf32>
    %cst_1 = arith.constant 0.0333333351 : f32
    %3 = vector.broadcast %cst_1 : f32 to vector<1x768xf32>
    %4 = arith.mulf %2, %3 : vector<1x768xf32>
    %c0_2 = arith.constant 0 : index
    %c0_3 = arith.constant 0 : index
    %5 = vector.load %arg1[%c0_2, %c0_3] : memref<30x768xf32, #tpu.memory_space<vmem>>, vector<30x768xf32>
    %cst_4 = arith.constant dense<0.000000e+00> : vector<768xf32>
    %6 = vector.multi_reduction <add>, %5, %cst_4 [0] : vector<30x768xf32> to vector<768xf32>
    %7 = vector.shape_cast %6 : vector<768xf32> to vector<1x768xf32>
    %cst_5 = arith.constant 0.0333333351 : f32
    %8 = vector.broadcast %cst_5 : f32 to vector<1x768xf32>
    %9 = arith.mulf %7, %8 : vector<1x768xf32>
    %10 = tpu.concatenate %4, %9 in 0 : vector<1x768xf32>, vector<1x768xf32> -> vector<2x768xf32>
    %c0_6 = arith.constant 0 : index
    %c0_7 = arith.constant 0 : index
    %11 = vector.load %arg2[%c0_6, %c0_7] : memref<768x128xbf16, #tpu.memory_space<vmem>>, vector<768x128xbf16>
    %12 = arith.extf %11 : vector<768x128xbf16> to vector<768x128xf32>
    %cst_8 = arith.constant dense<0.000000e+00> : vector<2x128xf32>
    %13 = tpu.matmul %10, %12, %cst_8 {dimension_numbers = #tpu.dot_dimension_numbers<[1], [0], [0], [1], [0, 0, 1, 1], [], []>} : vector<2x768xf32>, vector<768x128xf32>, vector<2x128xf32> -> vector<2x128xf32>
    %c0_9 = arith.constant 0 : index
    %c0_10 = arith.constant 0 : index
    %14 = vector.load %arg3[%c0_9, %c0_10] : memref<1x128xf32, #tpu.memory_space<vmem>>, vector<1x128xf32>
    %15 = vector.broadcast %14 : vector<1x128xf32> to vector<2x128xf32>
    %16 = arith.addf %13, %15 : vector<2x128xf32>
    %cst_11 = arith.constant dense<0xFF800000> : vector<2xf32>
    %17 = vector.multi_reduction <maximumf>, %16, %cst_11 [1] : vector<2x128xf32> to vector<2xf32>
    %18 = vector.shape_cast %17 : vector<2xf32> to vector<2x1xf32>
    %19 = vector.broadcast %18 : vector<2x1xf32> to vector<2x128xf32>
    %20 = arith.subf %16, %19 : vector<2x128xf32>
    %21 = math.exp %20 : vector<2x128xf32>
    %cst_12 = arith.constant dense<0.000000e+00> : vector<2xf32>
    %22 = vector.multi_reduction <add>, %21, %cst_12 [1] : vector<2x128xf32> to vector<2xf32>
    %23 = vector.shape_cast %22 : vector<2xf32> to vector<2x1xf32>
    %24 = vector.broadcast %23 : vector<2x1xf32> to vector<2x128xf32>
    %25 = arith.divf %21, %24 : vector<2x128xf32>
    %c0_13 = arith.constant 0 : index
    %c0_14 = arith.constant 0 : index
    %26 = vector.load %arg4[%c0_13, %c0_14] : memref<2x128xf32, #tpu.memory_space<vmem>>, vector<2x128xf32>
    tpu.vector_store %arg4[%c0_13, %c0_14], %25 {strides = array<i32>} : memref<2x128xf32, #tpu.memory_space<vmem>>, vector<2x128xf32>,
    return
  }
}

</mosaic_0001>

<bundles_post_ra>
// kernel: preference_forward.1
= control target key start
LH: loop header
LB: loop body
LE: loop exit
PB: predicated region body
PF: predicated region fallthrough
CT: control target
= control target key end

     0   :  { %vm44_vm0 = vcmask 1045504   ;;  %s1554_s0 = inlined_call_operand.vmem [shape: f32[30,768], index: 0, kind: input, shape index: {}]   ;;  %s1555_s1 = inlined_call_operand.vmem [shape: f32[30,768], index: 1, kind: input, shape index: {}]   ;;  %s1556_s2 = inlined_call_operand.vmem [shape: bf16[768,128], index: 2, kind: input, shape index: {}]   ;;  %s1557_s3 = inlined_call_operand.vmem [shape: f32[1,128], index: 3, kind: input, shape index: {}]   ;;  %s1558_s4 = inlined_call_operand.hbm [shape: f32[2,128], index: 4, kind: output, shape index: {}]  }
   0x1   :  { %v849_v0 = vld [vmem:[%s1556_s2 + $0x78] sm:$0xff]   ;;  %v848_v7 = vld [vmem:[%s1556_s2 + $0x70] sm:$0xff]   ;;  %v1071_v15 = vld [vmem:[%s1556_s2 + $0x68] sm:$0xff]  }
   0x2   :  { %v841_v1 = vld [vmem:[%s1556_s2 + $0x38] sm:$0xff]   ;;  %v705_v3 = vunpack.c.l.bf16 %v849_v0  ;;  %v706_v4 = vunpack.c.h.bf16 %v849_v0  ;;  %v1058_v8 = vld [vmem:[%s1556_s2 + $0x30] sm:$0xff]   ;;  %v702_v17 = vunpack.c.h.bf16 %v848_v7  ;;  %v1077_v19 = vld [vmem:[%s1556_s2 + $0x28] sm:$0xff]   ;;  %v701_v22 = vunpack.c.l.bf16 %v848_v7 }
   0x3   :  { %v865_v2 = vld [vmem:[%s1556_s2 + $0xf8] sm:$0xff]   ;;  %v674_v5 = vunpack.c.h.bf16 %v841_v1  ;;  %v673_v9 = vunpack.c.l.bf16 %v841_v1  ;;  %v864_v13 = vld [vmem:[%s1556_s2 + $0xf0] sm:$0xff]   ;;  %v670_v18 = vunpack.c.h.bf16 %v1058_v8  ;;  %v1082_v20 = vld [vmem:[%s1556_s2 + $0xe8] sm:$0xff]   ;;  %v669_v24 = vunpack.c.l.bf16 %v1058_v8 }
   0x4   :  { %v857_v6 = vld [vmem:[%s1556_s2 + $0xb8] sm:$0xff]   ;;  %v769_v10 = vunpack.c.l.bf16 %v865_v2  ;;  %v770_v11 = vunpack.c.h.bf16 %v865_v2  ;;  %v1066_v14 = vld [vmem:[%s1556_s2 + $0xb0] sm:$0xff]   ;;  %882 = vmatprep.subr.mxu0 %v706_v4  ;;  %v1087_v21 = vld [vmem:[%s1556_s2 + $0xa8] sm:$0xff]   ;;  %v766_v23 = vunpack.c.h.bf16 %v864_v13  ;;  %v698_v28 = vunpack.c.h.bf16 %v1071_v15 }
   0x5   :  { %v738_v12 = vunpack.c.h.bf16 %v857_v6  ;;  %v737_v16 = vunpack.c.l.bf16 %v857_v6  ;;  %883 = vmatpush3.msra.mxu0 %v674_v5  ;;  %v734_v25 = vunpack.c.h.bf16 %v1066_v14  ;;  %v1094_v26 = vld [vmem:[%s1556_s2 + $0x60] sm:$0xff]   ;;  %v765_v29 = vunpack.c.l.bf16 %v864_v13  ;;  %v1121_v38 = vld [vmem:[%s1556_s2 + $0x58] sm:$0xff]   ;;  %v1149_v50 = vld [vmem:[%s1556_s2 + $0x50] sm:$0xff]  }
   0x6   :  { %917 = vmatprep.subr.mxu1 %v770_v11  ;;  %v1099_v27 = vld [vmem:[%s1556_s2 + $0x20] sm:$0xff]   ;;  %884 = vmatprep.subr.mxu0 %v705_v3  ;;  %v666_v30 = vunpack.c.h.bf16 %v1077_v19  ;;  %v733_v31 = vunpack.c.l.bf16 %v1066_v14  ;;  %v697_v34 = vunpack.c.l.bf16 %v1071_v15  ;;  %v762_v35 = vunpack.c.h.bf16 %v1082_v20  ;;  %v1126_v39 = vld [vmem:[%s1556_s2 + $0x18] sm:$0xff]   ;;  %v1154_v51 = vld [vmem:[%s1556_s2 + $0x10] sm:$0xff]  }
   0x7   :  { %918 = vmatpush3.msra.mxu1 %v738_v12  ;;  %v1107_v32 = vld [vmem:[%s1556_s2 + $0xe0] sm:$0xff]   ;;  %885 = vmatpush3.msra.mxu0 %v673_v9  ;;  %v665_v36 = vunpack.c.l.bf16 %v1077_v19  ;;  %v730_v37 = vunpack.c.h.bf16 %v1087_v21  ;;  %v694_v40 = vunpack.c.h.bf16 %v1094_v26  ;;  %v761_v41 = vunpack.c.l.bf16 %v1082_v20  ;;  %v1135_v44 = vld [vmem:[%s1556_s2 + $0xd8] sm:$0xff]   ;;  %v1159_v52 = vld [vmem:[%s1556_s2 + $0xd0] sm:$0xff]  }
   0x8   :  { %v1112_v33 = vld [vmem:[%s1556_s2 + $0xa0] sm:$0xff]   ;;  %919 = vmatprep.subr.mxu1 %v769_v10  ;;  %886 = vmatprep.subr.mxu0 %v702_v17  ;;  %v662_v42 = vunpack.c.h.bf16 %v1099_v27  ;;  %v729_v43 = vunpack.c.l.bf16 %v1087_v21  ;;  %v1140_v45 = vld [vmem:[%s1556_s2 + $0x98] sm:$0xff]   ;;  %v693_v46 = vunpack.c.l.bf16 %v1094_v26  ;;  %v758_v47 = vunpack.c.h.bf16 %v1107_v32  ;;  %v1168_v57 = vld [vmem:[%s1556_s2 + $0x90] sm:$0xff]  }
   0x9   :  { %920 = vmatpush3.msra.mxu1 %v737_v16  ;;  %887 = vmatpush3.msra.mxu0 %v670_v18  ;;  %v661_v48 = vunpack.c.l.bf16 %v1099_v27  ;;  %v726_v49 = vunpack.c.h.bf16 %v1112_v33  ;;  %v690_v53 = vunpack.c.h.bf16 %v1121_v38  ;;  %v757_v54 = vunpack.c.l.bf16 %v1107_v32  ;;  %v1173_v58 = vld [vmem:[%s1556_s2 + $0x48] sm:$0xff]   ;;  %v1197_v2 = vld [vmem:[%s1556_s2 + $0x40] sm:$0xff]   ;;  %v25_v14 = vld [vmem:[%s1554_s0 + $0x38] sm:$0xff] }
   0xa   :  { %921 = vmatprep.subr.mxu1 %v766_v23  ;;  %888 = vmatprep.subr.mxu0 %v701_v22  ;;  %v658_v55 = vunpack.c.h.bf16 %v1126_v39  ;;  %v725_v56 = vunpack.c.l.bf16 %v1112_v33  ;;  %v1178_v59 = vld [vmem:[%s1556_s2 + $0x8] sm:$0xff]   ;;  %v689_v60 = vunpack.c.l.bf16 %v1121_v38  ;;  %v754_v61 = vunpack.c.h.bf16 %v1135_v44  ;;  %v1206_v7 = vld [vmem:[%s1556_s2] sm:$0xff]   ;;  %v37_v15 = vld [vmem:[%s1554_s0 + $0x98] sm:$0x3f] }
   0xb   :  { %922 = vmatpush3.msra.mxu1 %v734_v25  ;;  %889 = vmatpush3.msra.mxu0 %v669_v24  ;;  %v657_v62 = vunpack.c.l.bf16 %v1126_v39  ;;  %v722_v63 = vunpack.c.h.bf16 %v1140_v45  ;;  %v1187_v0 = vld [vmem:[%s1556_s2 + $0xc8] sm:$0xff]   ;;  %v686_v3 = vunpack.c.h.bf16 %v1149_v50  ;;  %v753_v4 = vunpack.c.l.bf16 %v1135_v44  ;;  %v1211_v8 = vld [vmem:[%s1556_s2 + $0xc0] sm:$0xff]   ;;  %v116_v24 = vld [vmem:[%s1555_s1 + $0x38] sm:$0xff] }
   0xc   :  { %923 = vmatprep.subr.mxu1 %v765_v29  ;;  %v1192_v1 = vld [vmem:[%s1556_s2 + $0x88] sm:$0xff]   ;;  %890 = vmatprep.subr.mxu0 %v698_v28  ;;  %v654_v5 = vunpack.c.h.bf16 %v1154_v51  ;;  %v721_v6 = vunpack.c.l.bf16 %v1140_v45  ;;  %v685_v10 = vunpack.c.l.bf16 %v1149_v50  ;;  %v750_v11 = vunpack.c.h.bf16 %v1159_v52  ;;  %v128_v28 = vld [vmem:[%s1555_s1 + $0x98] sm:$0x3f]  ;;  %v24_v19 = vld [vmem:[%s1554_s0 + $0x30] sm:$0xff] }
   0xd   :  { %924 = vmatpush3.msra.mxu1 %v733_v31  ;;  %v19_v9 = vld [vmem:[%s1554_s0 + $0x8] sm:$0xff]  ;;  %891 = vmatpush3.msra.mxu0 %v666_v30  ;;  %v653_v12 = vunpack.c.l.bf16 %v1154_v51  ;;  %v718_v13 = vunpack.c.h.bf16 %v1168_v57  ;;  %v682_v17 = vunpack.c.h.bf16 %v1173_v58  ;;  %v749_v18 = vunpack.c.l.bf16 %v1159_v52  ;;  %v36_v29 = vld [vmem:[%s1554_s0 + $0x90] sm:$0x3f]  ;;  %v109_v30 = vld [vmem:[%s1555_s1] sm:$0xff] }
   0xe   :  { %925 = vmatprep.subr.mxu1 %v762_v35  ;;  %v110_v16 = vld [vmem:[%s1555_s1 + $0x8] sm:$0xff]  ;;  %892 = vmatprep.subr.mxu0 %v697_v34  ;;  %v650_v20 = vunpack.c.h.bf16 %v1178_v59  ;;  %v717_v22 = vunpack.c.l.bf16 %v1168_v57  ;;  %v1254_v35 = vld [vmem:[%s1556_s2 + $0x80] sm:$0xff]   ;;  %v115_v21 = vld [vmem:[%s1555_s1 + $0x30] sm:$0xff]  ;;  %v53_v31 = vadd.f32 %v25_v14, %v19_v9  ;;  %v55_v9 = vsel %vm44_vm0, %v37_v15, 0.0 }
   0xf   :  { %926 = vmatpush3.msra.mxu1 %v730_v37  ;;  %v31_v23 = vld [vmem:[%s1554_s0 + $0x68] sm:$0xff]  ;;  %893 = vmatpush3.msra.mxu0 %v665_v36  ;;  %v18_v37 = vld [vmem:[%s1554_s0] sm:$0xff]  ;;  %v143_v34 = vadd.f32 %v116_v24, %v110_v16  ;;  %v145_v14 = vsel %vm44_vm0, %v128_v28, 0.0  ;;  %v1304_v24 = vld [vmem:[%s1556_s2 + $0x178] sm:$0xff]   ;;  %v45_v28 = vsel %vm44_vm0, %v36_v29, 0.0  ;;  %v710_v32 = vunpack.c.h.bf16 %v1254_v35 }
  0x10   :  { %v122_v25 = vld [vmem:[%s1555_s1 + $0x68] sm:$0xff]  ;;  %927 = vmatprep.subr.mxu1 %v761_v41  ;;  %894 = vmatprep.subr.mxu0 %v694_v40  ;;  %v677_v40 = vunpack.c.l.bf16 %v1197_v2  ;;  %v30_v36 = vld [vmem:[%s1554_s0 + $0x60] sm:$0xff]  ;;  %v42_v16 = vadd.f32 %v24_v19, %v18_v37  ;;  %v21_v26 = vld [vmem:[%s1554_s0 + $0x18] sm:$0xff]  ;;  %v133_v37 = vadd.f32 %v115_v21, %v109_v30  ;;  %v834_v30 = vunpack.c.h.bf16 %v1304_v24 }
  0x11   :  { %928 = vmatpush3.msra.mxu1 %v729_v43  ;;  %895 = vmatpush3.msra.mxu0 %v662_v42  ;;  %v742_v43 = vunpack.c.h.bf16 %v1211_v8  ;;  %v121_v41 = vld [vmem:[%s1555_s1 + $0x60] sm:$0xff]  ;;  %v127_v42 = vld [vmem:[%s1555_s1 + $0x90] sm:$0x3f]  ;;  %v144_v15 = vadd.f32 %v143_v34, %v122_v25  ;;  %v39_v19 = vld [vmem:[%s1554_s0 + $0xa8] sm:$0x3f]  ;;  %v709_v45 = vunpack.c.l.bf16 %v1254_v35  ;;  %v1559_v52 = vunpack.c.h.bf16 %v1187_v0 }
  0x12   :  { %929 = vmatprep.subr.mxu1 %v758_v47  ;;  %896 = vmatprep.subr.mxu0 %v693_v46  ;;  %v27_v46 = vld [vmem:[%s1554_s0 + $0x48] sm:$0xff]  ;;  %v112_v47 = vld [vmem:[%s1555_s1 + $0x18] sm:$0xff]  ;;  %v20_v34 = vld [vmem:[%s1554_s0 + $0x10] sm:$0xff]  ;;  %v1560_v57 = vunpack.c.l.bf16 %v1173_v58  ;;  %v1564_v58 = vunpack.c.h.bf16 %v1197_v2 }
  0x13   :  { %930 = vmatpush3.msra.mxu1 %v726_v49  ;;  %897 = vmatpush3.msra.mxu0 %v661_v48  ;;  %v54_v49 = vadd.f32 %v53_v31, %v31_v23  ;;  %v118_v27 = vld [vmem:[%s1555_s1 + $0x48] sm:$0xff]  ;;  %v43_v48 = vadd.f32 %v42_v16, %v30_v36  ;;  %v741_v23 = vunpack.c.l.bf16 %v1211_v8  ;;  %v33_v25 = vld [vmem:[%s1554_s0 + $0x78] sm:$0xff]  ;;  %v73_v36 = vadd.f32 %v27_v46, %v21_v26  ;;  %v32_v44 = vld [vmem:[%s1554_s0 + $0x70] sm:$0xff] }
  0x14   :  { %931 = vmatprep.subr.mxu1 %v757_v54  ;;  %898 = vmatprep.subr.mxu0 %v690_v53  ;;  %v135_v54 = vsel %vm44_vm0, %v127_v42, 0.0  ;;  %v130_v29 = vld [vmem:[%s1555_s1 + $0xa8] sm:$0x3f]  ;;  %v146_v53 = vadd.f32 %v145_v14, %v144_v15  ;;  %v124_v31 = vld [vmem:[%s1555_s1 + $0x78] sm:$0xff]  ;;  %v163_v21 = vadd.f32 %v118_v27, %v112_v47  ;;  %v117_v26 = vld [vmem:[%s1555_s1 + $0x40] sm:$0xff] }
  0x15   :  { %932 = vmatpush3.msra.mxu1 %v725_v56  ;;  %899 = vmatpush3.msra.mxu0 %v658_v55  ;;  %v56_v33 = vadd.f32 %v55_v9, %v54_v49  ;;  %v134_v56 = vadd.f32 %v133_v37, %v121_v41  ;;  %v26_v55 = vld [vmem:[%s1554_s0 + $0x40] sm:$0xff]  ;;  %v75_v41 = vsel %vm44_vm0, %v39_v19, 0.0  ;;  %v165_v38 = vsel %vm44_vm0, %v130_v29, 0.0 }
  0x16   :  { %933 = vmatprep.subr.mxu1 %v754_v61  ;;  %900 = vmatprep.subr.mxu0 %v689_v60  ;;  %v46_v61 = vadd.f32 %v45_v28, %v43_v48  ;;  %v147_v9 = vrot.slane %v146_v53, 4  ;;  %v38_v60 = vld [vmem:[%s1554_s0 + $0xa0] sm:$0x3f] }
  0x17   :  { %934 = vmatpush3.msra.mxu1 %v722_v63  ;;  %901 = vmatpush3.msra.mxu0 %v657_v62  ;;  %v57_v42 = vrot.slane %v56_v33, 4  ;;  %v136_v14 = vadd.f32 %v135_v54, %v134_v56  ;;  %v74_v62 = vadd.f32 %v73_v36, %v33_v25  ;;  %v164_v63 = vadd.f32 %v163_v21, %v124_v31  ;;  %v129_v50 = vld [vmem:[%s1555_s1 + $0xa0] sm:$0x3f] }
  0x18   :  { %935 = vmatprep.subr.mxu1 %v753_v4  ;;  %902 = vmatprep.subr.mxu0 %v686_v3  ;;  %v47_v39 = vrot.slane %v46_v61, 4  ;;  %v63_v4 = vadd.f32 %v26_v55, %v20_v34  ;;  %v148_v16 = vadd.f32 %v147_v9, %v146_v53  ;;  %v65_v49 = vsel %vm44_vm0, %v38_v60, 0.0 }
  0x19   :  { %936 = vmatpush3.msra.mxu1 %v721_v6  ;;  %903 = vmatpush3.msra.mxu0 %v654_v5  ;;  %v58_v47 = vadd.f32 %v57_v42, %v56_v33  ;;  %v137_v3 = vrot.slane %v136_v14, 4  ;;  %v111_v6 = vld [vmem:[%s1555_s1 + $0x10] sm:$0xff]  ;;  %v166_v46 = vadd.f32 %v165_v38, %v164_v63  ;;  %v155_v33 = vsel %vm44_vm0, %v129_v50, 0.0 }
  0x1a   :  { %937 = vmatprep.subr.mxu1 %v750_v11  ;;  %904 = vmatprep.subr.mxu0 %v685_v10  ;;  %v48_v5 = vadd.f32 %v47_v39, %v46_v61  ;;  %v76_v11 = vadd.f32 %v75_v41, %v74_v62  ;;  %v149_v28 = vrot.slane %v148_v16, 2  ;;  %v64_v19 = vadd.f32 %v63_v4, %v32_v44 }
  0x1b   :  { %938 = vmatpush3.msra.mxu1 %v718_v13  ;;  %905 = vmatpush3.msra.mxu0 %v653_v12  ;;  %v59_v15 = vrot.slane %v58_v47, 2  ;;  %v138_v37 = vadd.f32 %v137_v3, %v136_v14  ;;  %v167_v12 = vrot.slane %v166_v46, 4  ;;  %v153_v13 = vadd.f32 %v117_v26, %v111_v6 }
  0x1c   :  { %939 = vmatprep.subr.mxu1 %v749_v18  ;;  %906 = vmatprep.subr.mxu0 %v682_v17  ;;  %v49_v10 = vrot.slane %v48_v5, 2  ;;  %v77_v51 = vrot.slane %v76_v11, 4  ;;  %v150_v27 = vadd.f32 %v149_v28, %v148_v16  ;;  %v66_v54 = vadd.f32 %v65_v49, %v64_v19  ;;  %v123_v17 = vld [vmem:[%s1555_s1 + $0x70] sm:$0xff] }
  0x1d   :  { %940 = vmatpush3.msra.mxu1 %v717_v22  ;;  %907 = vmatpush3.msra.mxu0 %v650_v20  ;;  %v60_v18 = vadd.f32 %v59_v15, %v58_v47  ;;  %v139_v48 = vrot.slane %v138_v37, 2  ;;  %v1561_v22 = vunpack.c.h.bf16 %v1192_v1  ;;  %v168_v20 = vadd.f32 %v167_v12, %v166_v46 }
  0x1e   :  { %941 = vmatprep.subr.mxu1 %v1559_v52  ;;  %908 = vmatprep.subr.mxu0 %v1560_v57  ;;  %v50_v25 = vadd.f32 %v49_v10, %v48_v5  ;;  %v78_v29 = vadd.f32 %v77_v51, %v76_v11  ;;  %v1562_v53 = vunpack.c.l.bf16 %v1178_v59  ;;  %v1563_v56 = vunpack.c.l.bf16 %v1187_v0 }
  0x1f   :  { %942 = vmatpush3.msra.mxu1 %v1561_v22  ;;  %v61_v31 = vrot.slane %v60_v18, 1  ;;  %v151_v34 = vrot.slane %v150_v27, 1  ;;  %v140_v55 = vadd.f32 %v139_v48, %v138_v37  ;;  %v67_v61 = vrot.slane %v66_v54, 4 }
  0x20   :  { %909 = vmatpush3.msra.mxu0 %v1562_v53  ;;  %943 = vmatprep.subr.mxu1 %v1563_v56  ;;  %v1565_v36 = vunpack.c.l.bf16 %v1192_v1  ;;  %v51_v41 = vrot.slane %v50_v25, 1  ;;  %v79_v21 = vrot.slane %v78_v29, 2  ;;  %v169_v42 = vrot.slane %v168_v20, 2 }
  0x21   :  { %910 = vmatprep.subr.mxu0 %v1564_v58  ;;  %v154_v9 = vadd.f32 %v153_v13, %v123_v17  ;;  %v1566_v59 = vunpack.c.h.bf16 %v1206_v7  ;;  %v62_v0 = vadd.f32 %v61_v31, %v60_v18  ;;  %v152_v14 = vadd.f32 %v151_v34, %v150_v27 }
  0x22   :  { %944 = vmatpush3.msra.mxu1 %v1565_v36  ;;  %v141_v38 = vrot.slane %v140_v55, 1  ;;  %v68_v60 = vadd.f32 %v67_v61, %v66_v54 }
  0x23   :  { %911 = vmatpush3.msra.mxu0 %v1566_v59  ;;  %945 = vmatprep.subr.mxu1 %v742_v43 }
  0x24   :  { %9 = vsyncpa [#allocation3], 0  ;;  %912 = vmatprep.subr.mxu0 %v677_v40  ;;  %vm199_vm1 = vcmask 1040384   ;;  %946 = vmatpush3.msra.mxu1 %v710_v32  ;;  %v52_v1 = vadd.f32 %v51_v41, %v50_v25  ;;  %v80_v39 = vadd.f32 %v79_v21, %v78_v29  ;;  %v170_v62 = vadd.f32 %v169_v42, %v168_v20  ;;  %v873_v63 = vld [vmem:[%s1556_s2 + $0x138] sm:$0xff]   ;;  %v872_v35 = vld [vmem:[%s1556_s2 + $0x130] sm:$0xff]  }
  0x25   :  { %v1567_v43 = vunpack.c.l.bf16 %v1206_v7  ;;  %v104_v44 = vmul.f32 0.033333335, %v62_v0  ;;  %v194_v4 = vmul.f32 0.033333335, %v152_v14  ;;  %v142_v47 = vadd.f32 %v141_v38, %v140_v55  ;;  %947 = vmatprep.subr.mxu1 %v741_v23  ;;  %v880_v7 = vld [vmem:[%s1556_s2 + $0x170] sm:$0xff]   ;;  %v879_v51 = vld [vmem:[%s1556_s2 + $0x168] sm:$0xff]  }
  0x26   :  { %v69_v2 = vrot.slane %v68_v60, 2  ;;  %v103_v40 = vmul.f32 0.033333335, %v52_v1  ;;  %948 = vmatpush3.msra.mxu1 %v709_v45  ;;  %v81_v32 = vrot.slane %v80_v39, 1  ;;  %v171_v16 = vrot.slane %v170_v62, 1  ;;  %v871_v52 = vld [vmem:[%s1556_s2 + $0x128] sm:$0xff]  }
  0x27   :  { %913 = vmatpush3.msra.mxu0 %v1567_v43  ;;  %v156_v3 = vadd.f32 %v155_v33, %v154_v9  ;;  %v201_v6 = vsel %vm199_vm1, %v104_v44, %v194_v4  ;;  %v193_v26 = vmul.f32 0.033333335, %v142_v47  ;;  %v802_v8 = vunpack.c.h.bf16 %v873_v63  ;;  %v1458_v27 = vld [vmem:[%s1556_s2 + $0x160] sm:$0xff]   ;;  %v23_v22 = vld [vmem:[%s1554_s0 + $0x28] sm:$0xff]  ;;  %v29_v25 = vld [vmem:[%s1554_s0 + $0x58] sm:$0xff] }
  0x28   :  { %952 = vmatprep.subr.mxu0 %v834_v30  ;;  %v70_v23 = vadd.f32 %v69_v2, %v68_v60  ;;  %469 = vmatprep.mubr.f32.mxu0 %v201_v6  ;;  %v82_v5 = vadd.f32 %v81_v32, %v80_v39  ;;  %v172_v11 = vadd.f32 %v171_v16, %v170_v62  ;;  %v833_v30 = vunpack.c.l.bf16 %v1304_v24  ;;  %v1463_v57 = vld [vmem:[%s1556_s2 + $0x120] sm:$0xff]   ;;  %v35_v20 = vld [vmem:[%s1554_s0 + $0x88] sm:$0xff]  ;;  %v41_v33 = vld [vmem:[%s1554_s0 + $0xb8] sm:$0x3f] }
  0x29   :  { %v157_v46 = vrot.slane %v156_v3, 4  ;;  %v200_v45 = vsel %vm199_vm1, %v103_v40, %v193_v26  ;;  %v801_v49 = vunpack.c.l.bf16 %v873_v63  ;;  %v830_v15 = vunpack.c.h.bf16 %v880_v7  ;;  %v114_v53 = vld [vmem:[%s1555_s1 + $0x28] sm:$0xff]  ;;  %v120_v56 = vld [vmem:[%s1555_s1 + $0x58] sm:$0xff]  ;;  %v22_v61 = vld [vmem:[%s1554_s0 + $0x20] sm:$0xff] }
  0x2a   :  { %470 = vmatmul.mubr.f32.vlgmr.msra.gmra.mxu0 %v200_v45  ;;  %v106_v28 = vmul.f32 0.033333335, %v82_v5  ;;  %v196_v37 = vmul.f32 0.033333335, %v172_v11  ;;  %v71_v19 = vrot.slane %v70_v23, 1  ;;  %v798_v10 = vunpack.c.h.bf16 %v872_v35  ;;  %v28_v58 = vld [vmem:[%s1554_s0 + $0x50] sm:$0xff] }
  0x2b   :  { %v158_v50 = vadd.f32 %v157_v46, %v156_v3  ;;  %953 = vmatpush3.msra.mxu0 %v802_v8  ;;  %v829_v13 = vunpack.c.l.bf16 %v880_v7  ;;  %v797_v18 = vunpack.c.l.bf16 %v872_v35  ;;  %v826_v17 = vunpack.c.h.bf16 %v879_v51  ;;  %v132_v55 = vld [vmem:[%s1555_s1 + $0xb8] sm:$0x3f]  ;;  %v40_v42 = vld [vmem:[%s1554_s0 + $0xb0] sm:$0x3f]  ;;  %v113_v9 = vld [vmem:[%s1555_s1 + $0x20] sm:$0xff] }
  0x2c   :  { %v203_v24 = vsel %vm199_vm1, %v106_v28, %v196_v37  ;;  %954 = vmatprep.subr.mxu0 %v833_v30  ;;  %v72_v48 = vadd.f32 %v71_v19, %v70_v23  ;;  %v794_v29 = vunpack.c.h.bf16 %v871_v52  ;;  %v825_v34 = vunpack.c.l.bf16 %v879_v51  ;;  %v119_v59 = vld [vmem:[%s1555_s1 + $0x50] sm:$0xff]  ;;  %v126_v1 = vld [vmem:[%s1555_s1 + $0x88] sm:$0xff]  ;;  %v34_v39 = vld [vmem:[%s1554_s0 + $0x80] sm:$0xff] }
  0x2d   :  { %v159_v12 = vrot.slane %v158_v50, 2  ;;  %539 = vmatprep.mubr.f32.mxu1 %v203_v24  ;;  %955 = vmatpush3.msra.mxu0 %v801_v49  ;;  %v793_v36 = vunpack.c.l.bf16 %v871_v52  ;;  %v822_v41 = vunpack.c.h.bf16 %v1458_v27  ;;  %v790_v21 = vunpack.c.h.bf16 %v1463_v57  ;;  %v131_v62 = vld [vmem:[%s1555_s1 + $0xb0] sm:$0x3f]  ;;  %v877_v63 = vld [vmem:[%s1556_s2 + $0x158] sm:$0xff]   ;;  %v125_v2 = vld [vmem:[%s1555_s1 + $0x80] sm:$0xff] }
  0x2e   :  { %956 = vmatprep.subr.mxu0 %v830_v15  ;;  %v105_v0 = vmul.f32 0.033333335, %v72_v48  ;;  %v821_v38 = vunpack.c.l.bf16 %v1458_v27  ;;  %v93_v60 = vadd.f32 %v29_v25, %v23_v22  ;;  %v95_v43 = vsel %vm44_vm0, %v41_v33, 0.0  ;;  %v869_v32 = vld [vmem:[%s1556_s2 + $0x118] sm:$0xff]   ;;  %v876_v45 = vld [vmem:[%s1556_s2 + $0x150] sm:$0xff]   ;;  %v875_v27 = vld [vmem:[%s1556_s2 + $0x148] sm:$0xff]  }
  0x2f   :  { %v160_v54 = vadd.f32 %v159_v12, %v158_v50  ;;  %957 = vmatpush3.msra.mxu0 %v798_v10  ;;  %v183_v44 = vadd.f32 %v120_v56, %v114_v53  ;;  %v185_v4 = vsel %vm44_vm0, %v132_v55, 0.0  ;;  %v83_v47 = vadd.f32 %v28_v58, %v22_v61  ;;  %v868_v37 = vld [vmem:[%s1556_s2 + $0x110] sm:$0xff]   ;;  %v874_v55 = vld [vmem:[%s1556_s2 + $0x140] sm:$0xff]  }
  0x30   :  { %958 = vmatprep.subr.mxu0 %v829_v13  ;;  %v94_v16 = vadd.f32 %v93_v60, %v35_v20  ;;  %v85_v3 = vsel %vm44_vm0, %v40_v42, 0.0  ;;  %v173_v7 = vadd.f32 %v119_v59, %v113_v9  ;;  %v789_v6 = vunpack.c.l.bf16 %v1463_v57  ;;  %v867_v57 = vld [vmem:[%s1556_s2 + $0x108] sm:$0xff]  }
  0x31   :  { %v161_v31 = vrot.slane %v160_v54, 1  ;;  %959 = vmatpush3.msra.mxu0 %v797_v18  ;;  %v184_v26 = vadd.f32 %v183_v44, %v126_v1  ;;  %v84_v8 = vadd.f32 %v83_v47, %v34_v39  ;;  %v175_v23 = vsel %vm44_vm0, %v131_v62, 0.0 }
  0x32   :  { %960 = vmatprep.subr.mxu0 %v826_v17  ;;  %v818_v11 = vunpack.c.h.bf16 %v877_v63  ;;  %v96_v46 = vadd.f32 %v95_v43, %v94_v16  ;;  %v174_v30 = vadd.f32 %v173_v7, %v125_v2  ;;  %v786_v35 = vunpack.c.h.bf16 %v869_v32 }
  0x33   :  { %v162_v14 = vadd.f32 %v161_v31, %v160_v54  ;;  %961 = vmatpush3.msra.mxu0 %v794_v29  ;;  %v186_v49 = vadd.f32 %v185_v4, %v184_v26  ;;  %v86_v15 = vadd.f32 %v85_v3, %v84_v8  ;;  %v817_v28 = vunpack.c.l.bf16 %v877_v63  ;;  %v642_v8 = vld [vmem:[%s1557_s3] ss:$0 sm:$0xff]  ;;  %s1014_s3 = smov [#allocation2]  }
  0x34   :  { %962 = vmatprep.subr.mxu0 %v825_v34  ;;  %v97_v19 = vrot.slane %v96_v46, 4  ;;  %v176_v50 = vadd.f32 %v175_v23, %v174_v30  ;;  %v785_v10 = vunpack.c.l.bf16 %v869_v32  ;;  %v814_v12 = vunpack.c.h.bf16 %v876_v45  ;;  %s634_s24 = sshll.u32 %s1014_s3, 4  ;;  %s635_s24 = int_to_ptr.vmem [resolvable:$true] %s634_s24 }
  0x35   :  { %v195_v40 = vmul.f32 0.033333335, %v162_v14  ;;  %963 = vmatpush3.msra.mxu0 %v793_v36  ;;  %v187_v51 = vrot.slane %v186_v49, 4  ;;  %v87_v24 = vrot.slane %v86_v15, 4  ;;  %v782_v18 = vunpack.c.h.bf16 %v868_v37  ;;  %s992_s25 = scalar_lea.vmem %s635_s24, 32  ;;  %p997_p1 = scmp.lt.s32.totalorder %s635_s24, %s635_s24 }
  0x36   :  { %964 = vmatprep.subr.mxu0 %v822_v41  ;;  %v98_v13 = vadd.f32 %v97_v19, %v96_v46  ;;  %v177_v52 = vrot.slane %v176_v50, 4  ;;  %v813_v17 = vunpack.c.l.bf16 %v876_v45  ;;  %v781_v29 = vunpack.c.l.bf16 %v868_v37  ;;  %v866_v41 = vld [vmem:[%s1556_s2 + $0x100] sm:$0xff]   ;;  %p993_p0 = scmp.ne.s32.totalorder %s635_s24, %s992_s25  ;;  %p998_p2 = scmp.lt.s32.totalorder %s992_s25, %s992_s25 }
  0x37   :  { %v202_v5 = vsel %vm199_vm1, %v105_v0, %v195_v40  ;;  %965 = vmatpush3.msra.mxu0 %v790_v21  ;;  %v188_v48 = vadd.f32 %v187_v51, %v186_v49  ;;  %v88_v54 = vadd.f32 %v87_v24, %v86_v15  ;;  %v810_v53 = vunpack.c.h.bf16 %v875_v27 }
  0x38   :  { %540 = vmatmul.mubr.f32.vlgmr.msra.gmra.mxu1 %v202_v5  ;;  %966 = vmatprep.subr.mxu0 %v821_v38  ;;  %v99_v22 = vrot.slane %v98_v13, 2  ;;  %v178_v25 = vadd.f32 %v177_v52, %v176_v50  ;;  %v778_v34 = vunpack.c.h.bf16 %v867_v57  ;;  %v809_v36 = vunpack.c.l.bf16 %v875_v27  ;;  %p999_p3 = por %p998_p2, %p997_p1 }
  0x39   :  { %967 = vmatpush3.msra.mxu0 %v789_v6  ;;  %v189_v20 = vrot.slane %v188_v48, 2  ;;  %v89_v33 = vrot.slane %v88_v54, 2  ;;  %v777_v9 = vunpack.c.l.bf16 %v867_v57  ;;  %v806_v14 = vunpack.c.h.bf16 %v874_v55 }
  0x3a   :  { %968 = vmatprep.subr.mxu0 %v818_v11  ;;  %v100_v56 = vadd.f32 %v99_v22, %v98_v13  ;;  %v179_v31 = vrot.slane %v178_v25, 2  ;;  %v774_v1 = vunpack.c.h.bf16 %v866_v41  ;;  %v805_v63 = vunpack.c.l.bf16 %v874_v55  ;;  %p1000_p4 = pnand %p999_p3, %p993_p0 }
  0x3b   :  { %969 = vmatpush3.msra.mxu0 %v786_v35  ;;  %v190_v61 = vadd.f32 %v189_v20, %v188_v48  ;;  %v90_v58 = vadd.f32 %v89_v33, %v88_v54  ;;  %v773_v4 = vunpack.c.l.bf16 %v866_v41  ;;  %vm615_vm2 = vcmask 1041408  }
  0x3c   :  { %970 = vmatprep.subr.mxu0 %v817_v28  ;;  %v101_v21 = vrot.slane %v100_v56, 1  ;;  %v180_v42 = vadd.f32 %v179_v31, %v178_v25 }
  0x3d   :  { %971 = vmatpush3.msra.mxu0 %v785_v10  ;;  %v191_v59 = vrot.slane %v190_v61, 1  ;;  %v91_v0 = vrot.slane %v90_v58, 1 }
  0x3e   :  { %972 = vmatprep.subr.mxu0 %v814_v12  ;;  %v102_v38 = vadd.f32 %v101_v21, %v100_v56  ;;  %v181_v60 = vrot.slane %v180_v42, 1 }
  0x3f   :  { %973 = vmatpush3.msra.mxu0 %v782_v18  ;;  %v192_v39 = vadd.f32 %v191_v59, %v190_v61  ;;  %v92_v62 = vadd.f32 %v91_v0, %v90_v58 }
  0x40   :  { %974 = vmatprep.subr.mxu0 %v813_v17  ;;  %v108_v43 = vmul.f32 0.033333335, %v102_v38  ;;  %v182_v44 = vadd.f32 %v181_v60, %v180_v42 }
  0x41   :  { %975 = vmatpush3.msra.mxu0 %v781_v29  ;;  %v198_v47 = vmul.f32 0.033333335, %v192_v39  ;;  %v107_v2 = vmul.f32 0.033333335, %v92_v62 }
  0x42   :  { %976 = vmatprep.subr.mxu0 %v810_v53  ;;  %v197_v40 = vmul.f32 0.033333335, %v182_v44 }
  0x43   :  { %977 = vmatpush3.msra.mxu0 %v778_v34  ;;  %v205_v32 = vsel %vm199_vm1, %v108_v43, %v198_v47 }
  0x44   :  { %978 = vmatprep.subr.mxu0 %v809_v36  ;;  %609 = vmatprep.mubr.f32.mxu0 %v205_v32  ;;  %v204_v16 = vsel %vm199_vm1, %v107_v2, %v197_v40 }
  0x45   :  { %979 = vmatpush3.msra.mxu0 %v777_v9 }
  0x46   :  { %980 = vmatprep.subr.mxu0 %v806_v14 }
  0x47   :  { %981 = vmatpush3.msra.mxu0 %v774_v1 }
  0x48   :  { %982 = vmatprep.subr.mxu0 %v805_v63 }
  0x49   :  { %983 = vmatpush3.msra.mxu0 %v773_v4 }
  0x4a   :  { %610 = vmatmul.mubr.f32.vlgmr.msra.gmra.mxu0 %v204_v16 }
  0xea   :  { %v914_v3 = vpop.f32.mrf.mxu0 }
  0xec   :  { %v915_v7 = vpop.f32.mrf.mxu0 }
  0xed   :  { %v916_v26 = vadd.f32 %v915_v7, %v914_v3 }
  0xef   :  { %v472_v5 = vadd.f32 %v916_v26, %v642_v8 }
  0xf8   :  { %v949_v6 = vpop.f32.mrf.mxu1 }
  0xfa   :  { %v950_v23 = vpop.f32.mrf.mxu1 }
  0xfb   :  { %v951_v11 = vadd.f32 %v950_v23, %v949_v6 }
  0xfd   :  { %v542_v35 = vadd.f32 %v951_v11, %v472_v5 }
 0x10a   :  { %v984_v46 = vpop.f32.mrf.mxu0 }
 0x10c   :  { %v985_v30 = vpop.f32.mrf.mxu0 }
 0x10d   :  { %v986_v45 = vadd.f32 %v985_v30, %v984_v46 }
 0x10f   :  { %v612_v49 = vadd.f32 %v986_v45, %v542_v35 }
 0x111   :  { %v616_v15 = vsel %vm615_vm2, %v612_v49, -inf }
 0x112   :  { %617 = vmax.xlane.f32.xlu0 %v616_v15 }
 0x19b   :  { %v618_v28 = vpop.xlane.xlu0 %617 }
 0x19c   :  { %v619_v37 = vsub.f32 %v612_v49, %v618_v28 }
 0x19e   :  { %v620_v19 = vmul.f32 1.442695, %v619_v37 }
 0x1a0   :  { %988 = vpow2.f32 %v620_v19 }
 0x1ad   :  { %v989_v50 = vpop.eup %988 }
 0x1ae   :  { %v622_v10 = vsel %vm615_vm2, %v989_v50, 0.0 }
 0x1af   :  { %623 = vadd.xlane.f32.xlu0 %v622_v10 }
 0x238   :  { %v624_v51 = vpop.xlane.xlu0 %623 }
 0x239   :  { %990 = vrcp.f32 %v624_v51 }
 0x246   :  { %v991_v24 = vpop.eup %990 }
 0x247   :  { %v626_v12 = vmul.f32 %v991_v24, %v989_v50 }
 0x249   :  { %627 = vst [vmem:[#allocation2] sm:$0x3] %v626_v12 }
 0x24a   :  { %1003 = shalt.err (!%p1000_p4)
}
 0x24b   :  { %637 = dma.vmem_to_hbm [thread:$0]  %s635_s24, 32, %s1558_s4, [#allocation3]  }
 0x24c   :  { %1012 = dma.done.wait [#allocation3], 32  }
 0x24d   :  { %1013 = vsyncadd [#allocation3], 4294967264 }
 0x24e   :  { %641 = vsyncpa [#allocation3], 1 }

</bundles_post_ra>
